<compile_context>
chip_gen: v7x
topology: tpu7x:2x2x1
jax: 0.10.0
libtpu: 0.0.40
codegen_flags: <defaults>
</compile_context>

<pallas_src>
import jax
import jax.numpy as jnp
import numpy as np
from jax.experimental import pallas as pl
from jax.experimental.pallas import tpu as pltpu


def _build_fused_avg_matrix(seq_len, kernel_size, stride):
    """[L_out, L] matrix fusing edge-replicated padding with AvgPool1d(K, stride)."""
    p = (kernel_size - 1) // 2
    lp = seq_len + 2 * p
    l_out = (lp - kernel_size) // stride + 1          # handles odd AND even K, any stride
    a = np.zeros((l_out, seq_len), np.float32)
    inv_k = 1.0 / kernel_size
    for o in range(l_out):
        for j in range(kernel_size):
            t = o * stride + j - p                    # index into the un-padded series
            t = min(max(t, 0), seq_len - 1)           # edge replication
            a[o, t] += inv_k
    return a, l_out


def _round_up(v, m):
    return ((v + m - 1) // m) * m


def _pick_batch_tile(B, L, L_out, C, itemsize, vmem_budget=8 << 20, max_tile=16):
    """Largest divisor of B whose double-buffered VMEM footprint fits the budget."""
    lanes = _round_up(C, 128)                          # VMEM pads lanes to 128
    sublanes = _round_up(L, 8) + _round_up(max(L_out, 1), 8)
    per_batch = 2 * sublanes * lanes * itemsize        # double-buffered in + out blocks
    a_bytes = 2 * _round_up(L_out, 8) * _round_up(L, 128) * 4
    cap = max(1, (vmem_budget - a_bytes) // max(per_batch, 1))
    cap = min(cap, max_tile)
    if B >= 2:
        cap = min(cap, max(1, B // 2))                 # grid >= 2 so both v7x TCs get work
    bt = 1
    for d in range(1, min(B, cap) + 1):
        if B % d == 0:
            bt = d
    return bt


def _make_kernel(batch_tile):
    def kernel(a_ref, x_ref, o_ref):
        # a_ref: [L_out, L]        fused pad+avgpool matrix (resident across grid steps)
        # x_ref: [Bt, L, C]        activations in their original layout/dtype
        # o_ref: [Bt, L_out, C]
        a = a_ref[...]
        for b in range(batch_tile):                    # small static unroll (Bt <= 16)
            o_ref[b] = jnp.dot(
                a, x_ref[b],
                preferred_element_type=jnp.float32,
                precision=jax.lax.Precision.HIGHEST,
            ).astype(o_ref.dtype)
    return kernel


def moving_avg_forward(x, kernel_size, stride):
    """x: [B, L, C] -> [B, L_out, C], identical to the PyTorch moving_avg module."""
    B, L, C = x.shape
    a_np, L_out = _build_fused_avg_matrix(L, kernel_size, stride)
    a = jnp.asarray(a_np)                              # stays f32; tiny and resident

    itemsize = jnp.dtype(x.dtype).itemsize
    bt = _pick_batch_tile(B, L, L_out, C, itemsize)
    grid = (B // bt,)

    cost = pl.CostEstimate(
        flops=2 * B * L_out * L * C,
        transcendentals=0,
        bytes_accessed=(B * L * C + B * L_out * C) * itemsize + a_np.size * 4,
    )

    return pl.pallas_call(
        _make_kernel(bt),
        out_shape=jax.ShapeDtypeStruct((B, L_out, C), x.dtype),
        grid_spec=pltpu.PrefetchScalarGridSpec(
            num_scalar_prefetch=0,
            grid=grid,
            in_specs=[
                pl.BlockSpec((L_out, L), lambda i: (0, 0)),     # fused matrix, resident
                pl.BlockSpec((bt, L, C), lambda i: (i, 0, 0)),  # batch tile, native layout
            ],
            out_specs=pl.BlockSpec((bt, L_out, C), lambda i: (i, 0, 0)),
        ),
        compiler_params=pltpu.CompilerParams(
            dimension_semantics=("parallel",)),
        cost_estimate=cost,
    )(a, x)


def moving_avg_ref(x, kernel_size, stride):
    """Pure-JAX reference matching the PyTorch forward."""
    B, L, C = x.shape
    p = (kernel_size - 1) // 2
    front = jnp.repeat(x[:, :1, :], p, axis=1)
    end = jnp.repeat(x[:, -1:, :], p, axis=1)
    xpad = jnp.concatenate([front, x, end], axis=1)
    l_out = (L + 2 * p - kernel_size) // stride + 1
    wins = jnp.stack(
        [xpad[:, o * stride:o * stride + kernel_size, :] for o in range(l_out)],
        axis=1)                                        # [B, L_out, K, C]
    return jnp.mean(wins, axis=2)


if __name__ == "__main__":
    key = jax.random.PRNGKey(0)

    # (B, L, C, kernel_size, stride, dtype)
    configs = [
        (2, 8, 4, 5, 1, jnp.float32),      # DLinear-style odd kernel, stride 1
        (2, 8, 4, 4, 2, jnp.float32),      # even kernel + stride > 1 (output shrinks)
        (48, 96, 8, 25, 1, jnp.float32),   # realistic DLinear config, multi-step grid
        (48, 96, 8, 25, 1, jnp.bfloat16),  # low-precision activations (halved HBM traffic)
    ]
    for (B, L, C, K, S, dt) in configs:
        key, sub = jax.random.split(key)
        x = jax.random.normal(sub, (B, L, C), jnp.float32)
        out = jax.block_until_ready(moving_avg_forward(x.astype(dt), K, S))
        ref = moving_avg_ref(x, K, S)
        assert out.shape == ref.shape, (out.shape, ref.shape)
        assert out.dtype == dt, (out.dtype, dt)
        tol = 1e-5 if dt == jnp.float32 else 2e-2
        np.testing.assert_allclose(np.asarray(out, np.float32), np.asarray(ref),
                                   rtol=tol, atol=tol)

    print("KERNEL_OK")
</pallas_src>

<mosaic_0001>
module attributes {stable_mosaic.version = 11 : i64} {
  func.func @kernel(%arg0: i32, %arg1: memref<8x8xf32, #tpu.memory_space<vmem>>, %arg2: memref<1x8x4xf32, #tpu.memory_space<vmem>>, %arg3: memref<1x8x4xf32, #tpu.memory_space<vmem>>) attributes {dimension_semantics = [#tpu.dimension_semantics<parallel>], iteration_bounds = array<i64: 2>, scalar_prefetch = 0 : i64, scratch_operands = 0 : i64, tpu.core_type = #tpu.core_type<tc>, window_params = [{pipeline_mode = #tpu.pipeline_mode<synchronous>, transform_indices = @transform_0, window_bounds = array<i64: 8, 8>}, {transform_indices = @transform_1, window_bounds = array<i64: 1, 8, 4>}, {transform_indices = @transform_2, window_bounds = array<i64: 1, 8, 4>}]} {
    %c0 = arith.constant 0 : index
    %c0_0 = arith.constant 0 : index
    %0 = vector.load %arg1[%c0, %c0_0] : memref<8x8xf32, #tpu.memory_space<vmem>>, vector<8x8xf32>
    %c0_1 = arith.constant 0 : index
    %c0_2 = arith.constant 0 : index
    %c0_3 = arith.constant 0 : index
    %1 = vector.load %arg2[%c0_1, %c0_2, %c0_3] : memref<1x8x4xf32, #tpu.memory_space<vmem>>, vector<1x8x4xf32>
    %2 = vector.shape_cast %1 : vector<1x8x4xf32> to vector<8x4xf32>
    %cst = arith.constant dense<0.000000e+00> : vector<8x4xf32>
    %3 = tpu.matmul %0, %2, %cst {dimension_numbers = #tpu.dot_dimension_numbers<[1], [0], [0], [1], [0, 0, 1, 1], [], []>, precision = #tpu.contract_precision<fp32>} : vector<8x8xf32>, vector<8x4xf32>, vector<8x4xf32> -> vector<8x4xf32>
    %c0_4 = arith.constant 0 : index
    %c0_5 = arith.constant 0 : index
    %c0_6 = arith.constant 0 : index
    %4 = vector.load %arg3[%c0_4, %c0_5, %c0_6] : memref<1x8x4xf32, #tpu.memory_space<vmem>>, vector<1x8x4xf32>
    %5 = vector.shape_cast %4 : vector<1x8x4xf32> to vector<8x4xf32>
    %6 = vector.shape_cast %3 : vector<8x4xf32> to vector<1x8x4xf32>
    tpu.vector_store %arg3[%c0_4, %c0_5, %c0_6], %6 {strides = array<i32>} : memref<1x8x4xf32, #tpu.memory_space<vmem>>, vector<1x8x4xf32>,
    return
  }
  func.func @transform_0(%arg0: i32) -> (i32, i32) {
    %c0_i32 = arith.constant 0 : i32
    %c0_i32_0 = arith.constant 0 : i32
    %c0_i32_1 = arith.constant 0 : i32
    return %c0_i32, %c0_i32_0 : i32, i32
  }
  func.func @transform_1(%arg0: i32) -> (i32, i32, i32) {
    %c0_i32 = arith.constant 0 : i32
    %c0_i32_0 = arith.constant 0 : i32
    %c0_i32_1 = arith.constant 0 : i32
    return %arg0, %c0_i32, %c0_i32_0 : i32, i32, i32
  }
  func.func @transform_2(%arg0: i32) -> (i32, i32, i32) {
    %c0_i32 = arith.constant 0 : i32
    %c0_i32_0 = arith.constant 0 : i32
    %c0_i32_1 = arith.constant 0 : i32
    return %arg0, %c0_i32, %c0_i32_0 : i32, i32, i32
  }
}

</mosaic_0001>

<bundles_post_ra>
// kernel: tpu_custom_call.1
= control target key start
LH: loop header
LB: loop body
LE: loop exit
PB: predicated region body
PF: predicated region fallthrough
CT: control target
= control target key end

     0   :  { %s741_s9 = smov 0   ;;  %s774_s0 = inlined_call_operand.vmem [shape: f32[8,8], index: 0, kind: input, shape index: {}]   ;;  %s775_s1 = inlined_call_operand.vmem [shape: f32[2,8,4], index: 1, kind: input, shape index: {}]   ;;  %s776_s2 = inlined_call_operand.vmem [shape: f32[2,8,4], index: 2, kind: output, shape index: {}]  }
   0x1 LB: > { %s646_s10 = sadd.s32 4294967295, %s722_s9   ;;  %p650_p0 = scmp.ge.s32.totalorder %s722_s9, 1  ;;  %s722_s9 = sphi %s741_s9, %s12_s9  }
   0x2   : > { %p111_p1 = scmp.lt.s32.totalorder %s722_s9, 3 }
   0x4   : > { %p112_p2 = pnand %p650_p0, %p111_p1 }
   0x5   : > { %p131_p3 = scmp.lt.s32.totalorder (!%p112_p2), %s646_s10, 1  ;;  %v139_v0 = vld [vmem:[%s774_s0] sm:$0xff] (!%p112_p2)  ;;  %vm141_vm0 = vcmask (!%p112_p2), 64512   ;;  %v724_v1 = vmov (!%p112_p2), 0.0   ;;  %vm725_vm1 = vmmov (!%p112_p2), 0   ;;  %vm591_vm2 = vcmask (!%p112_p2), 31744  }
   0x6   : > { %115 = sbr.rel (%p112_p2) target bundleno = 253 (0xfd), region = 28  ;;  %682 = vmatprep.subr.mxu0 (!%p112_p2), %v724_v1  ;;  %684 = vmatprep.mubr.msk.f32.mxu0 (!%p112_p2), %vm725_vm1, %v724_v1  ;;  %v143_v2 = vsel (!%p112_p2), %vm141_vm0, %v139_v0, 0 }
   0x7   : > { %667 = vmatprep.subr.mxu1 (!%p112_p2), %v724_v1  ;;  %v211_v3 = vand.u32 (!%p112_p2), 4294901760, %v143_v2  ;;  %669 = vmatprep.mubr.msk.f32.mxu1 (!%p112_p2), %vm725_vm1, %v724_v1 }
   0x9   : > { %v212_v4 = vsub.f32 (!%p112_p2), %v143_v2, %v211_v3 }
   0xb   : > { %v213_v6 = vand.u32 (!%p112_p2), 4294901760, %v212_v4 }
   0xd   : > { %s778_s10 = smov (!%p131_p3, %s646_s10), 1  ;;  %v214_v8 = vsub.f32 %v212_v4, %v213_v6 }
   0xe   : > { %s651_s13 = sshll.u32 %s778_s10, 3 }
   0xf   : > { %s134_s16 = scalar_lea.vmem %s775_s1, %s651_s13  ;;  %v215_v10 = vand.u32 4294901760, %v214_v8  ;;  %s138_s19 = scalar_lea.vmem %s776_s2, %s651_s13 }
  0x10   : > { %v140_v5 = vld [vmem:[%s134_s16] sm:$0xff] }
  0x11   : > { %v146_v7 = vand.u32 4294901760, %v140_v5 }
  0x13   : > { %v223_v9 = vsub.f32 %v140_v5, %v146_v7  ;;  %683 = vmatpush3.msra.mxu0 %v146_v7  ;;  %668 = vmatpush3.msra.mxu1 %v146_v7 }
  0x14   : > { %685 = vmatmul.mubr.f32.vlgmr.msra.gmra.mrb[0].mxu0 %v213_v6  ;;  %672 = vmatprep.subr.mxu1 %v724_v1 }
  0x15   : > { %687 = vmatprep.subr.mxu0 %v724_v1  ;;  %v224_v11 = vand.u32 4294901760, %v223_v9  ;;  %689 = vmatprep.mubr.msk.f32.mxu0 %vm725_vm1, %v724_v1 }
  0x16   : > { %670 = vmatmul.mubr.f32.vlgmr.msra.gmra.mrb[0].mxu1 %v215_v10 }
  0x17   : > { %v225_v12 = vsub.f32 %v223_v9, %v224_v11  ;;  %688 = vmatpush3.msra.mxu0 %v224_v11  ;;  %674 = vmatprep.mubr.msk.f32.mxu1 %vm725_vm1, %v724_v1 }
  0x18   : > { %692 = vmatprep.subr.mxu0 %v724_v1 }
  0x19   : > { %v226_v13 = vand.u32 4294901760, %v225_v12 }
  0x1b   : > { %673 = vmatpush3.msra.mxu1 %v226_v13 }
  0x1c   : > { %690 = vmatmul.mubr.f32.vlgmr.msra.gmra.mrb[0].mxu0 %v211_v3  ;;  %677 = vmatprep.subr.mxu1 %v724_v1 }
  0x1d   : > { %693 = vmatpush3.msra.mxu0 %v146_v7  ;;  %694 = vmatprep.mubr.msk.f32.mxu0 %vm725_vm1, %v724_v1 }
  0x1e   : > { %675 = vmatmul.mubr.f32.vlgmr.msra.gmra.mrb[0].mxu1 %v211_v3 }
  0x1f   : > { %678 = vmatpush3.msra.mxu1 %v223_v9  ;;  %679 = vmatprep.mubr.msk.f32.mxu1 %vm725_vm1, %v724_v1 }
  0x24   : > { %695 = vmatmul.mubr.f32.vlgmr.msra.gmra.mrb[0].mxu0 %v211_v3 }
  0x26   : > { %680 = vmatmul.mubr.f32.vlgmr.msra.gmra.mrb[0].mxu1 %v212_v4 }
  0xf7   : > { %v587_v14 = vpop.f32.mrb[0].mxu0 }
  0xf8   : > { %v696_v15 = vpop.f32.mrb[1].mxu0 }
  0xf9   : > { %v367_v16 = vpop.f32.mrb[0].mxu1 }
  0xfa   : > { %v697_v17 = vadd.f32 %v587_v14, %v367_v16  ;;  %v681_v18 = vpop.f32.mrb[1].mxu1 }
  0xfc   : > { %592 = vst.msk [vmem:[%s138_s19] sm:$0xff] %vm591_vm2, %v697_v17 }
  0xfd PF: > { %s12_s9 = sadd.s32 1, %s722_s9  }
  0xfe   : > { %p9_p4 = scmp.ge.s32.totalorder %s12_s9, 4  }
 0x100   :  { %11 = sbr.rel (!%p9_p4) target bundleno = 1 (0x1), region = 58 }

</bundles_post_ra>
